<compile_context>
chip_gen: v7x
topology: tpu7x:2x2x1
jax: 0.10.0
libtpu: 0.0.40
codegen_flags: <defaults>
</compile_context>

<pallas_src>
import functools

import jax
import jax.numpy as jnp
import numpy as np
from jax.experimental import pallas as pl
from jax.experimental.pallas import tpu as pltpu


# ----------------------------------------------------------------------------
# Patch-region index tables for the synthetic ald_mulv* stand-ins (8x8 grid)
# ----------------------------------------------------------------------------
_PIDX = np.arange(64).reshape(8, 8)
_C44 = _PIDX[2:6, 2:6].reshape(-1)                       # central 4x4      (16)
_B48 = np.setdiff1d(_PIDX.reshape(-1), _C44)             # non-central      (48)
_M66 = _PIDX[1:7, 1:7].reshape(-1)
_R1 = np.setdiff1d(_M66, _C44)                           # inner ring       (20)
_R2 = np.setdiff1d(_PIDX.reshape(-1), _M66)              # outer ring       (28)


# ----------------------------------------------------------------------------
# Constant matrices (built once with numpy; baked as compile-time constants)
# ----------------------------------------------------------------------------
@functools.lru_cache(maxsize=None)
def _pool_matrix(H, W):
    """(H/2*W/2, H*W) matrix implementing 2x2 average pooling as a matmul."""
    Ho, Wo = H // 2, W // 2
    P = np.zeros((Ho * Wo, H * W), np.float32)
    for ho in range(Ho):
        for wo in range(Wo):
            r = ho * Wo + wo
            for dh in range(2):
                for dw in range(2):
                    P[r, (2 * ho + dh) * W + (2 * wo + dw)] = 0.25
    return P


@functools.lru_cache(maxsize=None)
def _patch_to_pixel_matrix(H, W, grid=8):
    """(H*W, grid*grid) one-hot matrix: pixel row -> its 8x8 patch index."""
    E = np.zeros((H * W, grid * grid), np.float32)
    ph, pw = H // grid, W // grid
    for h in range(H):
        for w in range(W):
            E[h * W + w, (h // ph) * grid + (w // pw)] = 1.0
    return E


# ----------------------------------------------------------------------------
# The single fused Pallas kernel (whole backbone + heads, one image per step)
# ----------------------------------------------------------------------------
def _fused_model_kernel(*refs, has_gate, inv1, inv2, inv3):
    if has_gate:
        (g_ref, e_ref, x_ref, w1_ref, b1_ref, w2_ref, b2_ref, w3_ref, b3_ref,
         p1_ref, p2_ref, hw1_ref, hw2_ref, hw3_ref, hb_ref, o_ref) = refs
    else:
        g_ref = e_ref = None
        (x_ref, w1_ref, b1_ref, w2_ref, b2_ref, w3_ref, b3_ref,
         p1_ref, p2_ref, hw1_ref, hw2_ref, hw3_ref, hb_ref, o_ref) = refs

    cdt = x_ref.dtype
    x = x_ref[0]                                                    # (HW, Cin)

    # ---- stage 1: 1x1 conv on the MXU; ALD gate as a per-row scale on the
    # pre-activation ((g * x) @ W == g * (x @ W)).
    a1 = jnp.dot(x, w1_ref[...], preferred_element_type=jnp.float32)  # (HW,C1)
    if has_gate:
        # Expand per-patch gates (64 scalars) to per-pixel on the MXU via the
        # constant one-hot patch->pixel matrix (MXU otherwise idle here).
        g_vec = g_ref[0]                                            # (64, 1)
        g_b = jnp.broadcast_to(g_vec, (g_vec.shape[0], a1.shape[1]))
        gmat = jnp.dot(e_ref[...], g_b, preferred_element_type=jnp.float32)
        a1 = a1 * gmat                                              # per-pixel gate
    h1 = jnp.maximum(a1 + b1_ref[...], 0.0)                         # (HW, C1) f32
    # GAP over the pooled map == GAP over h (2x2 windows tile exactly).
    gp1 = jnp.sum(h1, axis=0, keepdims=True) * inv1                 # (1, C1)
    # 2x2 avg-pool as a matmul (no sublane-strided slicing).
    p1 = jnp.dot(p1_ref[...], h1.astype(cdt),
                 preferred_element_type=jnp.float32)                # (HW/4, C1)

    # ---- stage 2
    h2 = jnp.maximum(jnp.dot(p1.astype(cdt), w2_ref[...],
                             preferred_element_type=jnp.float32) + b2_ref[...],
                     0.0)                                           # (HW/4, C2)
    gp2 = jnp.sum(h2, axis=0, keepdims=True) * inv2
    p2 = jnp.dot(p2_ref[...], h2.astype(cdt),
                 preferred_element_type=jnp.float32)                # (HW/16, C2)

    # ---- stage 3 (its pooled map is only used for GAP -> never materialized)
    h3 = jnp.maximum(jnp.dot(p2.astype(cdt), w3_ref[...],
                             preferred_element_type=jnp.float32) + b3_ref[...],
                     0.0)                                           # (HW/16, C3)
    gp3 = jnp.sum(h3, axis=0, keepdims=True) * inv3

    # ---- merged classifier heads: three tiny matmuls (avoids lane-concat);
    # output row is lane-dense (128 lanes).
    out = (jnp.dot(gp1.astype(cdt), hw1_ref[...],
                   preferred_element_type=jnp.float32)
           + jnp.dot(gp2.astype(cdt), hw2_ref[...],
                     preferred_element_type=jnp.float32)
           + jnp.dot(gp3.astype(cdt), hw3_ref[...],
                     preferred_element_type=jnp.float32)
           + hb_ref[...])
    o_ref[0] = out.astype(o_ref.dtype)


# ----------------------------------------------------------------------------
# Wrapper: one pallas_call for the whole forward
# ----------------------------------------------------------------------------
def fused_model_forward(params, x_rows, gpatch, H, W, *, n_views=1,
                        compute_dtype=jnp.float32):
    """x_rows: (B_img, H*W, Cin) NHWC rows; gpatch: (B_img*n_views, 64) or None."""
    assert H % 4 == 0 and W % 4 == 0
    B_img, HW, Cin = x_rows.shape
    C1 = params["conv1_w"].shape[1]
    C2 = params["conv2_w"].shape[1]
    C3 = params["conv3_w"].shape[1]
    n_rows = B_img * n_views
    has_gate = gpatch is not None
    cdt = compute_dtype

    P1 = jnp.asarray(_pool_matrix(H, W), cdt)
    P2 = jnp.asarray(_pool_matrix(H // 2, W // 2), cdt)

    w1 = params["conv1_w"].astype(cdt)
    b1 = params["conv1_b"].reshape(1, C1).astype(jnp.float32)
    w2 = params["conv2_w"].astype(cdt)
    b2 = params["conv2_b"].reshape(1, C2).astype(jnp.float32)
    w3 = params["conv3_w"].astype(cdt)
    b3 = params["conv3_b"].reshape(1, C3).astype(jnp.float32)
    hw1 = params["head_w1"].astype(cdt)
    hw2 = params["head_w2"].astype(cdt)
    hw3 = params["head_w3"].astype(cdt)
    hb = params["head_b"].astype(jnp.float32)

    # Row index for gates/output: view-major ordering for the 'mul' path
    # ([all images view0; all images view1; ...]), plain image index otherwise.
    def row_idx(b, v):
        return (v * B_img + b, 0, 0)

    def x_idx(b, v):           # independent of the view axis -> x fetched once
        return (b, 0, 0)

    def const2(b, v):          # weights / constants: fetched once
        return (0, 0)

    in_specs, args = [], []
    if has_gate:
        assert H % 8 == 0 and W % 8 == 0, "gated paths assume an 8x8 patch grid"
        E = jnp.asarray(_patch_to_pixel_matrix(H, W), cdt)
        in_specs += [pl.BlockSpec((1, 64, 1), row_idx),
                     pl.BlockSpec(E.shape, const2)]
        args += [gpatch.reshape(n_rows, 64, 1).astype(cdt), E]
    in_specs.append(pl.BlockSpec((1, HW, Cin), x_idx))
    args.append(x_rows.astype(cdt))
    for arr in (w1, b1, w2, b2, w3, b3, P1, P2, hw1, hw2, hw3, hb):
        in_specs.append(pl.BlockSpec(arr.shape, const2))
        args.append(arr)

    kern = functools.partial(
        _fused_model_kernel, has_gate=has_gate,
        inv1=1.0 / (H * W),
        inv2=1.0 / ((H // 2) * (W // 2)),
        inv3=1.0 / ((H // 4) * (W // 4)))

    out = pl.pallas_call(
        kern,
        grid=(B_img, n_views),
        in_specs=in_specs,
        out_specs=pl.BlockSpec((1, 1, 128), row_idx),
        out_shape=jax.ShapeDtypeStruct((n_rows, 1, 128), jnp.float32),
        compiler_params=pltpu.CompilerParams(
            dimension_semantics=("parallel", "arbitrary")),
    )(*args)

    out = out.reshape(n_rows, 128)
    n = params["cls1_w"].shape[1]                   # num_classes
    return out[:, 0:n], out[:, n:2 * n], out[:, 2 * n:3 * n], out[:, 3 * n:4 * n]


# ----------------------------------------------------------------------------
# ALD gating stand-ins: produce per-patch gates on a standardized 8x8 grid
# (the per-pixel expansion + multiply is fused into the Pallas kernel)
# ----------------------------------------------------------------------------
def _to_patch8(g, s):
    """(B, s, s) patch gates -> (B, 64) gates on an 8x8 grid."""
    B = g.shape[0]
    r = 8 // s
    if r > 1:
        g = jnp.repeat(jnp.repeat(g, r, axis=1), r, axis=2)
    return g.reshape(B, 64)


def aldlayer_gate(alpha, batch_seq, s):
    g = jax.nn.sigmoid(alpha[batch_seq])                  # (B, s*s)
    return _to_patch8(g.reshape(-1, s, s), s), g


def ald_mulv1_gate(params, batch_seq):
    # TODO(synk): ald_mulv1 internals unavailable; stand-in = global gate x
    #             gates on the central 4x4 patches of an 8x8 grid.
    gc = jax.nn.sigmoid(params["mulv1_central"][batch_seq])   # (B, 16)
    gg = jax.nn.sigmoid(params["mulv1_global"][batch_seq])    # (B, 1)
    B = gc.shape[0]
    flat = jnp.ones((B, 64), gc.dtype).at[:, _C44].set(gc) * gg
    return flat, gc, gg


def ald_mulv2_gate(params, batch_seq):
    # TODO(synk): ald_mulv2 internals unavailable; stand-in = central 4x4 +
    #             boundary-ring gates on an 8x8 grid.
    gc = jax.nn.sigmoid(params["mulv2_central"][batch_seq])   # (B, 16)
    gb = jax.nn.sigmoid(params["mulv2_boundary"][batch_seq])  # (B, 48)
    B = gc.shape[0]
    flat = jnp.zeros((B, 64), gc.dtype).at[:, _C44].set(gc).at[:, _B48].set(gb)
    return flat, gc, gb


def ald_mulv4_gate(params, batch_seq):
    # TODO(synk): ald_mulv4 internals unavailable; stand-in = central 4x4 +
    #             two boundary rings on an 8x8 grid.
    gc = jax.nn.sigmoid(params["mulv4_central"][batch_seq])   # (B, 16)
    g1 = jax.nn.sigmoid(params["mulv4_bound1"][batch_seq])    # (B, 20)
    g2 = jax.nn.sigmoid(params["mulv4_bound2"][batch_seq])    # (B, 28)
    B = gc.shape[0]
    flat = (jnp.zeros((B, 64), gc.dtype)
            .at[:, _C44].set(gc).at[:, _R1].set(g1).at[:, _R2].set(g2))
    return flat, gc, g1, g2


# ----------------------------------------------------------------------------
# Full model forward (stand-in for load_model_channelatt + heads)
# ----------------------------------------------------------------------------
def model4channatt_forward(params, x, size, batch_seq, batchsize, train,
                           compute_dtype=jnp.float32):
    del batchsize  # kept for signature fidelity with the PyTorch module
    B, C, H, W = x.shape
    # NCHW -> NHWC rows (one tiny XLA transpose; everything after is fused).
    x_rows = jnp.transpose(x, (0, 2, 3, 1)).reshape(B, H * W, C)

    result = None
    gpatch = None
    n_views = 1
    if train:
        if size == "mul":
            g0, r0 = aldlayer_gate(params["ald8_alpha"], batch_seq, 8)
            g1, rc1, rg1 = ald_mulv1_gate(params, batch_seq)
            g2, rc2, rb2 = ald_mulv2_gate(params, batch_seq)
            g4, rc4, rb41, rb42 = ald_mulv4_gate(params, batch_seq)
            # TODO(synk): load_model_channelatt's handling of a list input is
            # unavailable; the 4 gated views are processed as a 4B batch
            # (view-major); the kernel re-reads the same image for all 4 views.
            gpatch = jnp.concatenate([g0, g1, g2, g4], axis=0)    # (4B, 64)
            result = [r0, rc1, rg1, rc2, rb2, rc4, rb41, rb42]
            n_views = 4
        elif size == "4":
            gpatch, result = aldlayer_gate(params["ald4_alpha"], batch_seq, 4)
        elif size == "2":
            gpatch, result = aldlayer_gate(params["ald2_alpha"], batch_seq, 2)
        # size == 'original': no gating

    xc1, xc2, xc3, x_concat = fused_model_forward(
        params, x_rows, gpatch, H, W, n_views=n_views,
        compute_dtype=compute_dtype)

    if size == "original":
        return xc1, xc2, xc3, x_concat
    return xc1, xc2, xc3, x_concat, result


# ----------------------------------------------------------------------------
# Parameters (+ one-time head merging, OUTSIDE the jitted forward)
# ----------------------------------------------------------------------------
def init_params(key, num_train, in_ch=4, num_classes=8, feats=(16, 32, 64)):
    ks = jax.random.split(key, 32)
    p = {}
    p["ald8_alpha"] = 0.1 * jax.random.normal(ks[0], (num_train, 64), jnp.float32)
    p["ald4_alpha"] = 0.1 * jax.random.normal(ks[1], (num_train, 16), jnp.float32)
    p["ald2_alpha"] = 0.1 * jax.random.normal(ks[2], (num_train, 4), jnp.float32)
    p["mulv1_central"] = 0.1 * jax.random.normal(ks[3], (num_train, 16), jnp.float32)
    p["mulv1_global"] = 0.1 * jax.random.normal(ks[4], (num_train, 1), jnp.float32)
    p["mulv2_central"] = 0.1 * jax.random.normal(ks[5], (num_train, 16), jnp.float32)
    p["mulv2_boundary"] = 0.1 * jax.random.normal(ks[6], (num_train, 48), jnp.float32)
    p["mulv4_central"] = 0.1 * jax.random.normal(ks[7], (num_train, 16), jnp.float32)
    p["mulv4_bound1"] = 0.1 * jax.random.normal(ks[8], (num_train, 20), jnp.float32)
    p["mulv4_bound2"] = 0.1 * jax.random.normal(ks[9], (num_train, 28), jnp.float32)
    chans = (in_ch,) + feats
    for i in range(3):
        p[f"conv{i + 1}_w"] = (jax.random.normal(ks[10 + i], (chans[i], chans[i + 1]),
                                                 jnp.float32) / jnp.sqrt(chans[i]))
        p[f"conv{i + 1}_b"] = jnp.zeros((chans[i + 1],), jnp.float32)
    for i, f in enumerate(feats):
        p[f"cls{i + 1}_w"] = (jax.random.normal(ks[13 + i], (f, num_classes),
                                                jnp.float32) / jnp.sqrt(f))
        p[f"cls{i + 1}_b"] = jnp.zeros((num_classes,), jnp.float32)
    fc = sum(feats)
    p["clsc_w"] = jax.random.normal(ks[16], (fc, num_classes), jnp.float32) / jnp.sqrt(fc)
    p["clsc_b"] = jnp.zeros((num_classes,), jnp.float32)
    return p


def prepare_params(params, num_classes=8):
    """Merge cls1/cls2/cls3/clsc into lane-dense per-stage (C_i,128) head
    matrices ONCE, outside the jitted forward (no per-call scatter chain)."""
    p = dict(params)
    n = num_classes
    f1, f2, f3 = p["cls1_w"].shape[0], p["cls2_w"].shape[0], p["cls3_w"].shape[0]
    NP = 128
    hw1 = jnp.zeros((f1, NP), jnp.float32)
    hw1 = hw1.at[:, 0:n].set(p["cls1_w"]).at[:, 3 * n:4 * n].set(p["clsc_w"][:f1])
    hw2 = jnp.zeros((f2, NP), jnp.float32)
    hw2 = hw2.at[:, n:2 * n].set(p["cls2_w"]).at[:, 3 * n:4 * n].set(
        p["clsc_w"][f1:f1 + f2])
    hw3 = jnp.zeros((f3, NP), jnp.float32)
    hw3 = hw3.at[:, 2 * n:3 * n].set(p["cls3_w"]).at[:, 3 * n:4 * n].set(
        p["clsc_w"][f1 + f2:])
    hb = jnp.zeros((1, NP), jnp.float32)
    hb = (hb.at[0, 0:n].set(p["cls1_b"]).at[0, n:2 * n].set(p["cls2_b"])
            .at[0, 2 * n:3 * n].set(p["cls3_b"]).at[0, 3 * n:4 * n].set(p["clsc_b"]))
    p.update(head_w1=hw1, head_w2=hw2, head_w3=hw3, head_b=hb)
    return p


# ----------------------------------------------------------------------------
# Pure-JAX reference (ungated path) for a numerical sanity check
# ----------------------------------------------------------------------------
def _reference_forward(params, x_nchw):
    h = jnp.transpose(x_nchw, (0, 2, 3, 1))
    pooled = []
    for i in range(3):
        w = params[f"conv{i + 1}_w"]
        b = params[f"conv{i + 1}_b"]
        h = jnp.maximum(jnp.einsum("bhwc,cf->bhwf", h, w) + b, 0.0)
        B, H, W, C = h.shape
        h = h.reshape(B, H // 2, 2, W // 2, 2, C).mean(axis=(2, 4))
        pooled.append(h.mean(axis=(1, 2)))
    xc1 = pooled[0] @ params["cls1_w"] + params["cls1_b"]
    xc2 = pooled[1] @ params["cls2_w"] + params["cls2_b"]
    xc3 = pooled[2] @ params["cls3_w"] + params["cls3_b"]
    xcc = jnp.concatenate(pooled, axis=1) @ params["clsc_w"] + params["clsc_b"]
    return xc1, xc2, xc3, xcc


if __name__ == "__main__":
    num_train = 8
    batchsize = 2
    params = prepare_params(init_params(jax.random.PRNGKey(0), num_train))

    kx, _ = jax.random.split(jax.random.PRNGKey(0))
    x = jax.random.normal(kx, (2, 4, 16, 16), dtype=jnp.float32)   # NCHW like torch
    batch_seq = jnp.array([1, 5], dtype=jnp.int32)

    fwd = jax.jit(model4channatt_forward,
                  static_argnames=("size", "batchsize", "train", "compute_dtype"))

    # 'original' path -> 4-tuple; check numerics vs pure-JAX reference.
    out_orig = jax.block_until_ready(
        fwd(params, x, size="original", batch_seq=batch_seq,
            batchsize=batchsize, train=True))
    assert len(out_orig) == 4 and out_orig[3].shape == (2, 8)
    ref = _reference_forward(params, x)
    for a, b in zip(out_orig, ref):
        assert jnp.allclose(a, b, rtol=2e-2, atol=2e-2), "mismatch vs reference"

    # train, size '4' -> 5-tuple, result = (B, 16) patch gates
    out4 = jax.block_until_ready(
        fwd(params, x, size="4", batch_seq=batch_seq,
            batchsize=batchsize, train=True))
    assert out4[0].shape == (2, 8) and out4[4].shape == (2, 16)

    # train, size '2' -> result = (B, 4)
    out2 = jax.block_until_ready(
        fwd(params, x, size="2", batch_seq=batch_seq,
            batchsize=batchsize, train=True))
    assert out2[4].shape == (2, 4)

    # train, size 'mul' -> 4 gated views through the backbone + 8 gate tensors
    outm = jax.block_until_ready(
        fwd(params, x, size="mul", batch_seq=batch_seq,
            batchsize=batchsize, train=True))
    assert outm[0].shape == (8, 8) and outm[3].shape == (8, 8)
    assert len(outm[4]) == 8 and outm[4][0].shape == (2, 64)

    # eval path -> 4-tuple
    out_eval = jax.block_until_ready(
        fwd(params, x, size="original", batch_seq=batch_seq,
            batchsize=batchsize, train=False))
    assert len(out_eval) == 4

    # bf16 MXU operands (v6e/v7x-native path); shape check only.
    out_bf16 = jax.block_until_ready(
        fwd(params, x, size="original", batch_seq=batch_seq,
            batchsize=batchsize, train=False, compute_dtype=jnp.bfloat16))
    assert len(out_bf16) == 4 and out_bf16[3].shape == (2, 8)

    print("KERNEL_OK")
</pallas_src>

<mosaic_0001>
module attributes {stable_mosaic.version = 11 : i64} {
  func.func @_fused_model_kernel(%arg0: i32, %arg1: i32, %arg2: memref<1x256x4xf32, #tpu.memory_space<vmem>>, %arg3: memref<4x16xf32, #tpu.memory_space<vmem>>, %arg4: memref<1x16xf32, #tpu.memory_space<vmem>>, %arg5: memref<16x32xf32, #tpu.memory_space<vmem>>, %arg6: memref<1x32xf32, #tpu.memory_space<vmem>>, %arg7: memref<32x64xf32, #tpu.memory_space<vmem>>, %arg8: memref<1x64xf32, #tpu.memory_space<vmem>>, %arg9: memref<64x256xf32, #tpu.memory_space<vmem>>, %arg10: memref<16x64xf32, #tpu.memory_space<vmem>>, %arg11: memref<16x128xf32, #tpu.memory_space<vmem>>, %arg12: memref<32x128xf32, #tpu.memory_space<vmem>>, %arg13: memref<64x128xf32, #tpu.memory_space<vmem>>, %arg14: memref<1x128xf32, #tpu.memory_space<vmem>>, %arg15: memref<1x1x128xf32, #tpu.memory_space<vmem>>) attributes {dimension_semantics = [#tpu.dimension_semantics<parallel>, #tpu.dimension_semantics<arbitrary>], iteration_bounds = array<i64: 2, 1>, scalar_prefetch = 0 : i64, scratch_operands = 0 : i64, tpu.core_type = #tpu.core_type<tc>, window_params = [{transform_indices = @transform_0, window_bounds = array<i64: 1, 256, 4>}, {pipeline_mode = #tpu.pipeline_mode<synchronous>, transform_indices = @transform_1, window_bounds = array<i64: 4, 16>}, {pipeline_mode = #tpu.pipeline_mode<synchronous>, transform_indices = @transform_2, window_bounds = array<i64: 1, 16>}, {pipeline_mode = #tpu.pipeline_mode<synchronous>, transform_indices = @transform_3, window_bounds = array<i64: 16, 32>}, {pipeline_mode = #tpu.pipeline_mode<synchronous>, transform_indices = @transform_4, window_bounds = array<i64: 1, 32>}, {pipeline_mode = #tpu.pipeline_mode<synchronous>, transform_indices = @transform_5, window_bounds = array<i64: 32, 64>}, {pipeline_mode = #tpu.pipeline_mode<synchronous>, transform_indices = @transform_6, window_bounds = array<i64: 1, 64>}, {pipeline_mode = #tpu.pipeline_mode<synchronous>, transform_indices = @transform_7, window_bounds = array<i64: 64, 256>}, {pipeline_mode = #tpu.pipeline_mode<synchronous>, transform_indices = @transform_8, window_bounds = array<i64: 16, 64>}, {pipeline_mode = #tpu.pipeline_mode<synchronous>, transform_indices = @transform_9, window_bounds = array<i64: 16, 128>}, {pipeline_mode = #tpu.pipeline_mode<synchronous>, transform_indices = @transform_10, window_bounds = array<i64: 32, 128>}, {pipeline_mode = #tpu.pipeline_mode<synchronous>, transform_indices = @transform_11, window_bounds = array<i64: 64, 128>}, {pipeline_mode = #tpu.pipeline_mode<synchronous>, transform_indices = @transform_12, window_bounds = array<i64: 1, 128>}, {transform_indices = @transform_13, window_bounds = array<i64: 1, 1, 128>}]} {
    %c0 = arith.constant 0 : index
    %c0_0 = arith.constant 0 : index
    %c0_1 = arith.constant 0 : index
    %0 = vector.load %arg2[%c0, %c0_0, %c0_1] : memref<1x256x4xf32, #tpu.memory_space<vmem>>, vector<1x256x4xf32>
    %1 = vector.shape_cast %0 : vector<1x256x4xf32> to vector<256x4xf32>
    %c0_2 = arith.constant 0 : index
    %c0_3 = arith.constant 0 : index
    %2 = vector.load %arg3[%c0_2, %c0_3] : memref<4x16xf32, #tpu.memory_space<vmem>>, vector<4x16xf32>
    %cst = arith.constant dense<0.000000e+00> : vector<256x16xf32>
    %3 = tpu.matmul %1, %2, %cst {dimension_numbers = #tpu.dot_dimension_numbers<[1], [0], [0], [1], [0, 0, 1, 1], [], []>} : vector<256x4xf32>, vector<4x16xf32>, vector<256x16xf32> -> vector<256x16xf32>
    %c0_4 = arith.constant 0 : index
    %c0_5 = arith.constant 0 : index
    %4 = vector.load %arg4[%c0_4, %c0_5] : memref<1x16xf32, #tpu.memory_space<vmem>>, vector<1x16xf32>
    %5 = vector.broadcast %4 : vector<1x16xf32> to vector<256x16xf32>
    %6 = arith.addf %3, %5 : vector<256x16xf32>
    %cst_6 = arith.constant 0.000000e+00 : f32
    %7 = vector.broadcast %cst_6 : f32 to vector<256x16xf32>
    %8 = arith.maximumf %6, %7 : vector<256x16xf32>
    %cst_7 = arith.constant dense<0.000000e+00> : vector<16xf32>
    %9 = vector.multi_reduction <add>, %8, %cst_7 [0] : vector<256x16xf32> to vector<16xf32>
    %10 = vector.shape_cast %9 : vector<16xf32> to vector<1x16xf32>
    %cst_8 = arith.constant 3.906250e-03 : f32
    %11 = vector.broadcast %cst_8 : f32 to vector<1x16xf32>
    %12 = arith.mulf %10, %11 : vector<1x16xf32>
    %c0_9 = arith.constant 0 : index
    %c0_10 = arith.constant 0 : index
    %13 = vector.load %arg9[%c0_9, %c0_10] : memref<64x256xf32, #tpu.memory_space<vmem>>, vector<64x256xf32>
    %cst_11 = arith.constant dense<0.000000e+00> : vector<64x16xf32>
    %14 = tpu.matmul %13, %8, %cst_11 {dimension_numbers = #tpu.dot_dimension_numbers<[1], [0], [0], [1], [0, 0, 1, 1], [], []>} : vector<64x256xf32>, vector<256x16xf32>, vector<64x16xf32> -> vector<64x16xf32>
    %c0_12 = arith.constant 0 : index
    %c0_13 = arith.constant 0 : index
    %15 = vector.load %arg5[%c0_12, %c0_13] : memref<16x32xf32, #tpu.memory_space<vmem>>, vector<16x32xf32>
    %cst_14 = arith.constant dense<0.000000e+00> : vector<64x32xf32>
    %16 = tpu.matmul %14, %15, %cst_14 {dimension_numbers = #tpu.dot_dimension_numbers<[1], [0], [0], [1], [0, 0, 1, 1], [], []>} : vector<64x16xf32>, vector<16x32xf32>, vector<64x32xf32> -> vector<64x32xf32>
    %c0_15 = arith.constant 0 : index
    %c0_16 = arith.constant 0 : index
    %17 = vector.load %arg6[%c0_15, %c0_16] : memref<1x32xf32, #tpu.memory_space<vmem>>, vector<1x32xf32>
    %18 = vector.broadcast %17 : vector<1x32xf32> to vector<64x32xf32>
    %19 = arith.addf %16, %18 : vector<64x32xf32>
    %cst_17 = arith.constant 0.000000e+00 : f32
    %20 = vector.broadcast %cst_17 : f32 to vector<64x32xf32>
    %21 = arith.maximumf %19, %20 : vector<64x32xf32>
    %cst_18 = arith.constant dense<0.000000e+00> : vector<32xf32>
    %22 = vector.multi_reduction <add>, %21, %cst_18 [0] : vector<64x32xf32> to vector<32xf32>
    %23 = vector.shape_cast %22 : vector<32xf32> to vector<1x32xf32>
    %cst_19 = arith.constant 1.562500e-02 : f32
    %24 = vector.broadcast %cst_19 : f32 to vector<1x32xf32>
    %25 = arith.mulf %23, %24 : vector<1x32xf32>
    %c0_20 = arith.constant 0 : index
    %c0_21 = arith.constant 0 : index
    %26 = vector.load %arg10[%c0_20, %c0_21] : memref<16x64xf32, #tpu.memory_space<vmem>>, vector<16x64xf32>
    %cst_22 = arith.constant dense<0.000000e+00> : vector<16x32xf32>
    %27 = tpu.matmul %26, %21, %cst_22 {dimension_numbers = #tpu.dot_dimension_numbers<[1], [0], [0], [1], [0, 0, 1, 1], [], []>} : vector<16x64xf32>, vector<64x32xf32>, vector<16x32xf32> -> vector<16x32xf32>
    %c0_23 = arith.constant 0 : index
    %c0_24 = arith.constant 0 : index
    %28 = vector.load %arg7[%c0_23, %c0_24] : memref<32x64xf32, #tpu.memory_space<vmem>>, vector<32x64xf32>
    %cst_25 = arith.constant dense<0.000000e+00> : vector<16x64xf32>
    %29 = tpu.matmul %27, %28, %cst_25 {dimension_numbers = #tpu.dot_dimension_numbers<[1], [0], [0], [1], [0, 0, 1, 1], [], []>} : vector<16x32xf32>, vector<32x64xf32>, vector<16x64xf32> -> vector<16x64xf32>
    %c0_26 = arith.constant 0 : index
    %c0_27 = arith.constant 0 : index
    %30 = vector.load %arg8[%c0_26, %c0_27] : memref<1x64xf32, #tpu.memory_space<vmem>>, vector<1x64xf32>
    %31 = vector.broadcast %30 : vector<1x64xf32> to vector<16x64xf32>
    %32 = arith.addf %29, %31 : vector<16x64xf32>
    %cst_28 = arith.constant 0.000000e+00 : f32
    %33 = vector.broadcast %cst_28 : f32 to vector<16x64xf32>
    %34 = arith.maximumf %32, %33 : vector<16x64xf32>
    %cst_29 = arith.constant dense<0.000000e+00> : vector<64xf32>
    %35 = vector.multi_reduction <add>, %34, %cst_29 [0] : vector<16x64xf32> to vector<64xf32>
    %36 = vector.shape_cast %35 : vector<64xf32> to vector<1x64xf32>
    %cst_30 = arith.constant 6.250000e-02 : f32
    %37 = vector.broadcast %cst_30 : f32 to vector<1x64xf32>
    %38 = arith.mulf %36, %37 : vector<1x64xf32>
    %c0_31 = arith.constant 0 : index
    %c0_32 = arith.constant 0 : index
    %39 = vector.load %arg11[%c0_31, %c0_32] : memref<16x128xf32, #tpu.memory_space<vmem>>, vector<16x128xf32>
    %cst_33 = arith.constant dense<0.000000e+00> : vector<1x128xf32>
    %40 = tpu.matmul %12, %39, %cst_33 {dimension_numbers = #tpu.dot_dimension_numbers<[1], [0], [0], [1], [0, 0, 1, 1], [], []>} : vector<1x16xf32>, vector<16x128xf32>, vector<1x128xf32> -> vector<1x128xf32>
    %c0_34 = arith.constant 0 : index
    %c0_35 = arith.constant 0 : index
    %41 = vector.load %arg12[%c0_34, %c0_35] : memref<32x128xf32, #tpu.memory_space<vmem>>, vector<32x128xf32>
    %cst_36 = arith.constant dense<0.000000e+00> : vector<1x128xf32>
    %42 = tpu.matmul %25, %41, %cst_36 {dimension_numbers = #tpu.dot_dimension_numbers<[1], [0], [0], [1], [0, 0, 1, 1], [], []>} : vector<1x32xf32>, vector<32x128xf32>, vector<1x128xf32> -> vector<1x128xf32>
    %43 = arith.addf %40, %42 : vector<1x128xf32>
    %c0_37 = arith.constant 0 : index
    %c0_38 = arith.constant 0 : index
    %44 = vector.load %arg13[%c0_37, %c0_38] : memref<64x128xf32, #tpu.memory_space<vmem>>, vector<64x128xf32>
    %cst_39 = arith.constant dense<0.000000e+00> : vector<1x128xf32>
    %45 = tpu.matmul %38, %44, %cst_39 {dimension_numbers = #tpu.dot_dimension_numbers<[1], [0], [0], [1], [0, 0, 1, 1], [], []>} : vector<1x64xf32>, vector<64x128xf32>, vector<1x128xf32> -> vector<1x128xf32>
    %46 = arith.addf %43, %45 : vector<1x128xf32>
    %c0_40 = arith.constant 0 : index
    %c0_41 = arith.constant 0 : index
    %47 = vector.load %arg14[%c0_40, %c0_41] : memref<1x128xf32, #tpu.memory_space<vmem>>, vector<1x128xf32>
    %48 = arith.addf %46, %47 : vector<1x128xf32>
    %c0_42 = arith.constant 0 : index
    %c0_43 = arith.constant 0 : index
    %c0_44 = arith.constant 0 : index
    %49 = vector.load %arg15[%c0_42, %c0_43, %c0_44] : memref<1x1x128xf32, #tpu.memory_space<vmem>>, vector<1x1x128xf32>
    %50 = vector.shape_cast %49 : vector<1x1x128xf32> to vector<1x128xf32>
    %51 = vector.shape_cast %48 : vector<1x128xf32> to vector<1x1x128xf32>
    tpu.vector_store %arg15[%c0_42, %c0_43, %c0_44], %51 {strides = array<i32>} : memref<1x1x128xf32, #tpu.memory_space<vmem>>, vector<1x1x128xf32>,
    return
  }
  func.func @transform_0(%arg0: i32, %arg1: i32) -> (i32, i32, i32) {
    %c0_i32 = arith.constant 0 : i32
    %c0_i32_0 = arith.constant 0 : i32
    %c0_i32_1 = arith.constant 0 : i32
    return %arg0, %c0_i32, %c0_i32_0 : i32, i32, i32
  }
  func.func @transform_1(%arg0: i32, %arg1: i32) -> (i32, i32) {
    %c0_i32 = arith.constant 0 : i32
    %c0_i32_0 = arith.constant 0 : i32
    %c0_i32_1 = arith.constant 0 : i32
    return %c0_i32, %c0_i32_0 : i32, i32
  }
  func.func @transform_2(%arg0: i32, %arg1: i32) -> (i32, i32) {
    %c0_i32 = arith.constant 0 : i32
    %c0_i32_0 = arith.constant 0 : i32
    %c0_i32_1 = arith.constant 0 : i32
    return %c0_i32, %c0_i32_0 : i32, i32
  }
  func.func @transform_3(%arg0: i32, %arg1: i32) -> (i32, i32) {
    %c0_i32 = arith.constant 0 : i32
    %c0_i32_0 = arith.constant 0 : i32
    %c0_i32_1 = arith.constant 0 : i32
    return %c0_i32, %c0_i32_0 : i32, i32
  }
  func.func @transform_4(%arg0: i32, %arg1: i32) -> (i32, i32) {
    %c0_i32 = arith.constant 0 : i32
    %c0_i32_0 = arith.constant 0 : i32
    %c0_i32_1 = arith.constant 0 : i32
    return %c0_i32, %c0_i32_0 : i32, i32
  }
  func.func @transform_5(%arg0: i32, %arg1: i32) -> (i32, i32) {
    %c0_i32 = arith.constant 0 : i32
    %c0_i32_0 = arith.constant 0 : i32
    %c0_i32_1 = arith.constant 0 : i32
    return %c0_i32, %c0_i32_0 : i32, i32
  }
  func.func @transform_6(%arg0: i32, %arg1: i32) -> (i32, i32) {
    %c0_i32 = arith.constant 0 : i32
    %c0_i32_0 = arith.constant 0 : i32
    %c0_i32_1 = arith.constant 0 : i32
    return %c0_i32, %c0_i32_0 : i32, i32
  }
  func.func @transform_7(%arg0: i32, %arg1: i32) -> (i32, i32) {
    %c0_i32 = arith.constant 0 : i32
    %c0_i32_0 = arith.constant 0 : i32
    %c0_i32_1 = arith.constant 0 : i32
    return %c0_i32, %c0_i32_0 : i32, i32
  }
  func.func @transform_8(%arg0: i32, %arg1: i32) -> (i32, i32) {
    %c0_i32 = arith.constant 0 : i32
    %c0_i32_0 = arith.constant 0 : i32
    %c0_i32_1 = arith.constant 0 : i32
    return %c0_i32, %c0_i32_0 : i32, i32
  }
  func.func @transform_9(%arg0: i32, %arg1: i32) -> (i32, i32) {
    %c0_i32 = arith.constant 0 : i32
    %c0_i32_0 = arith.constant 0 : i32
    %c0_i32_1 = arith.constant 0 : i32
    return %c0_i32, %c0_i32_0 : i32, i32
  }
  func.func @transform_10(%arg0: i32, %arg1: i32) -> (i32, i32) {
    %c0_i32 = arith.constant 0 : i32
    %c0_i32_0 = arith.constant 0 : i32
    %c0_i32_1 = arith.constant 0 : i32
    return %c0_i32, %c0_i32_0 : i32, i32
  }
  func.func @transform_11(%arg0: i32, %arg1: i32) -> (i32, i32) {
    %c0_i32 = arith.constant 0 : i32
    %c0_i32_0 = arith.constant 0 : i32
    %c0_i32_1 = arith.constant 0 : i32
    return %c0_i32, %c0_i32_0 : i32, i32
  }
  func.func @transform_12(%arg0: i32, %arg1: i32) -> (i32, i32) {
    %c0_i32 = arith.constant 0 : i32
    %c0_i32_0 = arith.constant 0 : i32
    %c0_i32_1 = arith.constant 0 : i32
    return %c0_i32, %c0_i32_0 : i32, i32
  }
  func.func @transform_13(%arg0: i32, %arg1: i32) -> (i32, i32, i32) {
    %c2_i32 = arith.constant 2 : i32
    %0 = arith.muli %arg1, %c2_i32 : i32
    %1 = arith.addi %0, %arg0 : i32
    %c0_i32 = arith.constant 0 : i32
    %c0_i32_0 = arith.constant 0 : i32
    %c0_i32_1 = arith.constant 0 : i32
    return %1, %c0_i32, %c0_i32_0 : i32, i32, i32
  }
}

</mosaic_0001>

<bundles_post_ra>
// kernel: model4channatt_forward.1
= control target key start
LH: loop header
LB: loop body
LE: loop exit
PB: predicated region body
PF: predicated region fallthrough
CT: control target
= control target key end

     0   :  { %s2236_s25 = smov 0   ;;  %s2238_s26 = smov 0   ;;  %s2597_s0 = inlined_call_operand.vmem [shape: f32[2,256,4], index: 0, kind: input, shape index: {}]   ;;  %s2598_s1 = inlined_call_operand.vmem [shape: f32[4,16], index: 1, kind: input, shape index: {}]   ;;  %s2599_s2 = inlined_call_operand.vmem [shape: f32[1,16], index: 2, kind: input, shape index: {}]   ;;  %s2600_s3 = inlined_call_operand.vmem [shape: f32[16,32], index: 3, kind: input, shape index: {}]   ;;  %s2601_s4 = inlined_call_operand.vmem [shape: f32[1,32], index: 4, kind: input, shape index: {}]   ;;  %s2602_s5 = inlined_call_operand.vmem [shape: f32[32,64], index: 5, kind: input, shape index: {}]   ;;  %s2603_s6 = inlined_call_operand.vmem [shape: f32[1,64], index: 6, kind: input, shape index: {}]   ;;  %s2604_s7 = inlined_call_operand.vmem [shape: f32[64,256], index: 7, kind: input, shape index: {}]   ;;  %s2605_s8 = inlined_call_operand.vmem [shape: f32[16,64], index: 8, kind: input, shape index: {}]   ;;  %s2606_s9 = inlined_call_operand.vmem [shape: f32[16,128], index: 9, kind: input, shape index: {}]   ;;  %s2607_s10 = inlined_call_operand.vmem [shape: f32[32,128], index: 10, kind: input, shape index: {}]   ;;  %s2608_s11 = inlined_call_operand.vmem [shape: f32[64,128], index: 11, kind: input, shape index: {}]   ;;  %s2609_s12 = inlined_call_operand.vmem [shape: f32[1,128], index: 12, kind: input, shape index: {}]   ;;  %s2610_s13 = inlined_call_operand.vmem [shape: f32[2,1,128], index: 13, kind: output, shape index: {}]  }
   0x1   :  { %s2240_s27 = smov 0  }
   0x2 LB: > { %s35_s28 = sadd.s32 1, %s2157_s26  ;;  %p1709_p0 = scmp.ge.s32.totalorder %s2161_s27, 1  ;;  %s2161_s27 = sphi %s2240_s27, %s23_s27   ;;  %s2157_s26 = sphi %s2238_s26, %s2612_s26   ;;  %s2153_s25 = sphi %s2236_s25, %s2611_s25  }
   0x3   : > { %p37_p1 = scmp.ge.s32.totalorder %s35_s28, 2  ;;  %p403_p2 = scmp.lt.s32.totalorder %s2161_s27, 3 }
   0x5   : > { %s2614_s28 = smov (%p37_p1, %s35_s28), 0  ;;  %p404_p3 = pnand %p1709_p0, %p403_p2 }
   0x6   : > { %v491_v0 = vld [vmem:[%s2598_s1] sm:$0xf] (!%p404_p3)  ;;  %vm596_vm0 = vcmask (!%p404_p3), 1043456   ;;  %p447_p4 = scmp.lt.s32.totalorder (!%p404_p3), %s2153_s25, 1  ;;  %vm499_vm1 = vcmask (!%p404_p3), 31744   ;;  %v929_v33 = vld [vmem:[%s2604_s7 + $0x8] sm:$0xff] (!%p404_p3) }
   0x7   : > { %407 = sbr.rel (%p404_p3) target bundleno = 1433 (0x599), region = 72  ;;  %1898 = vmatprep.subr.msk.mxu0 (!%p404_p3), %vm596_vm0, %v491_v0  ;;  %1008 = vmatprep.mubr.f32.mxu1 (!%p404_p3), %v929_v33  ;;  %v2335_v34 = vld [vmem:[%s2599_s2] ss:$0 sm:$0xff] (!%p404_p3)  ;;  %vm857_vm2 = vcmask (!%p404_p3), 130048   ;;  %vm1220_vm3 = vcmask (!%p404_p3), 523264   ;;  %vm1195_vm4 = vcmask (!%p404_p3), 261120  }
   0x8   : > { %1899 = vmatpush3.msk.msra.mxu0 (!%p404_p3), %vm596_vm0, %v491_v0  ;;  %vm2164_vm5 = vmmov (!%p404_p3), 0  }
   0xe   : > { %s2616_s25 = smov (!%p447_p4, %s2153_s25), 1 }
   0xf   : > { %s1765_s14 = sshll.u32 %s2616_s25, 8  ;;  %s456_s30 = scalar_lea.vmem %s2610_s13, %s2616_s25 }
  0x10   : > { %s2263_s17 = scalar_lea.vmem %s2597_s0, %s1765_s14 }
  0x11   : > { %v459_v1 = vld [vmem:[%s2263_s17] sm:$0xff]  ;;  %v460_v2 = vld [vmem:[%s2263_s17 + $0x8] sm:$0xff]  ;;  %v461_v3 = vld [vmem:[%s2263_s17 + $0x10] sm:$0xff] }
  0x12   : > { %1900 = vmatprep.mubr.msk.f32.mxu0 %vm499_vm1, %v459_v1  ;;  %v462_v4 = vld [vmem:[%s2263_s17 + $0x18] sm:$0xff]  ;;  %v463_v5 = vld [vmem:[%s2263_s17 + $0x20] sm:$0xff]  ;;  %v464_v6 = vld [vmem:[%s2263_s17 + $0x28] sm:$0xff] }
  0x13   : > { %1901 = vmatmul.mubr.msk.f32.vlgmr.msra.gmra.mrb[0].mxu0 %vm499_vm1, %v460_v2  ;;  %v465_v7 = vld [vmem:[%s2263_s17 + $0x30] sm:$0xff]  ;;  %v466_v8 = vld [vmem:[%s2263_s17 + $0x38] sm:$0xff]  ;;  %v467_v9 = vld [vmem:[%s2263_s17 + $0x40] sm:$0xff] }
  0x14   : > { %1903 = vmatprep.mubr.msk.f32.mxu0 %vm499_vm1, %v461_v3  ;;  %v468_v10 = vld [vmem:[%s2263_s17 + $0x48] sm:$0xff]  ;;  %v469_v11 = vld [vmem:[%s2263_s17 + $0x50] sm:$0xff]  ;;  %v470_v12 = vld [vmem:[%s2263_s17 + $0x58] sm:$0xff] }
  0x15   : > { %v471_v13 = vld [vmem:[%s2263_s17 + $0x60] sm:$0xff]  ;;  %v472_v14 = vld [vmem:[%s2263_s17 + $0x68] sm:$0xff]  ;;  %v473_v15 = vld [vmem:[%s2263_s17 + $0x70] sm:$0xff] }
  0x16   : > { %v474_v16 = vld [vmem:[%s2263_s17 + $0x78] sm:$0xff]  ;;  %v475_v17 = vld [vmem:[%s2263_s17 + $0x80] sm:$0xff]  ;;  %v476_v18 = vld [vmem:[%s2263_s17 + $0x88] sm:$0xff] }
  0x17   : > { %1904 = vmatmul.mubr.msk.f32.gmra.mrb[2].mxu0 %vm499_vm1, %v462_v4  ;;  %v477_v19 = vld [vmem:[%s2263_s17 + $0x90] sm:$0xff]  ;;  %v478_v20 = vld [vmem:[%s2263_s17 + $0x98] sm:$0xff]  ;;  %v479_v21 = vld [vmem:[%s2263_s17 + $0xa0] sm:$0xff] }
  0x18   : > { %1906 = vmatprep.mubr.msk.f32.mxu0 %vm499_vm1, %v463_v5  ;;  %v480_v22 = vld [vmem:[%s2263_s17 + $0xa8] sm:$0xff]  ;;  %v481_v23 = vld [vmem:[%s2263_s17 + $0xb0] sm:$0xff]  ;;  %v482_v24 = vld [vmem:[%s2263_s17 + $0xb8] sm:$0xff] }
  0x19   : > { %v483_v25 = vld [vmem:[%s2263_s17 + $0xc0] sm:$0xff]  ;;  %v484_v26 = vld [vmem:[%s2263_s17 + $0xc8] sm:$0xff]  ;;  %v485_v27 = vld [vmem:[%s2263_s17 + $0xd0] sm:$0xff] }
  0x1a   : > { %v486_v28 = vld [vmem:[%s2263_s17 + $0xd8] sm:$0xff]  ;;  %v487_v29 = vld [vmem:[%s2263_s17 + $0xe0] sm:$0xff]  ;;  %v488_v30 = vld [vmem:[%s2263_s17 + $0xe8] sm:$0xff] }
  0x1b   : > { %1907 = vmatmul.mubr.msk.f32.gmra.mrb[4].mxu0 %vm499_vm1, %v464_v6  ;;  %v489_v31 = vld [vmem:[%s2263_s17 + $0xf0] sm:$0xff]  ;;  %v490_v32 = vld [vmem:[%s2263_s17 + $0xf8] sm:$0xff] }
  0x1c   : > { %1909 = vmatprep.mubr.msk.f32.mxu0 %vm499_vm1, %v465_v7 }
  0x1f   : > { %1910 = vmatmul.mubr.msk.f32.gmra.mrb[6].mxu0 %vm499_vm1, %v466_v8 }
  0x20   : > { %1912 = vmatprep.mubr.msk.f32.mxu0 %vm499_vm1, %v467_v9 }
  0x23   : > { %1913 = vmatmul.mubr.msk.f32.gmra.mrb[8].mxu0 %vm499_vm1, %v468_v10 }
  0x24   : > { %1915 = vmatprep.mubr.msk.f32.mxu0 %vm499_vm1, %v469_v11 }
  0x27   : > { %1916 = vmatmul.mubr.msk.f32.gmra.mrb[10].mxu0 %vm499_vm1, %v470_v12 }
  0x28   : > { %1918 = vmatprep.mubr.msk.f32.mxu0 %vm499_vm1, %v471_v13 }
  0x2b   : > { %1919 = vmatmul.mubr.msk.f32.gmra.mrb[12].mxu0 %vm499_vm1, %v472_v14 }
  0x2c   : > { %1921 = vmatprep.mubr.msk.f32.mxu0 %vm499_vm1, %v473_v15 }
  0x2f   : > { %1922 = vmatmul.mubr.msk.f32.gmra.mrb[14].mxu0 %vm499_vm1, %v474_v16 }
  0x30   : > { %1924 = vmatprep.mubr.msk.f32.mxu0 %vm499_vm1, %v475_v17 }
  0x33   : > { %1925 = vmatmul.mubr.msk.f32.gmra.mrb[16].mxu0 %vm499_vm1, %v476_v18 }
  0x34   : > { %1927 = vmatprep.mubr.msk.f32.mxu0 %vm499_vm1, %v477_v19 }
  0x37   : > { %1928 = vmatmul.mubr.msk.f32.gmra.mrb[18].mxu0 %vm499_vm1, %v478_v20 }
  0x38   : > { %1930 = vmatprep.mubr.msk.f32.mxu0 %vm499_vm1, %v479_v21 }
  0x3b   : > { %1931 = vmatmul.mubr.msk.f32.gmra.mrb[20].mxu0 %vm499_vm1, %v480_v22 }
  0x3c   : > { %1933 = vmatprep.mubr.msk.f32.mxu0 %vm499_vm1, %v481_v23 }
  0x3f   : > { %1934 = vmatmul.mubr.msk.f32.gmra.mrb[22].mxu0 %vm499_vm1, %v482_v24 }
  0x40   : > { %1936 = vmatprep.mubr.msk.f32.mxu0 %vm499_vm1, %v483_v25 }
  0x43   : > { %1937 = vmatmul.mubr.msk.f32.gmra.mrb[24].mxu0 %vm499_vm1, %v484_v26 }
  0x44   : > { %1939 = vmatprep.mubr.msk.f32.mxu0 %vm499_vm1, %v485_v27 }
  0x47   : > { %1940 = vmatmul.mubr.msk.f32.gmra.mrb[26].mxu0 %vm499_vm1, %v486_v28 }
  0x48   : > { %1942 = vmatprep.mubr.msk.f32.mxu0 %vm499_vm1, %v487_v29 }
  0x4b   : > { %1943 = vmatmul.mubr.msk.f32.gmra.mrb[28].mxu0 %vm499_vm1, %v488_v30 }
  0x4c   : > { %1945 = vmatprep.mubr.msk.f32.mxu0 %vm499_vm1, %v489_v31 }
  0x4f   : > { %1946 = vmatmul.mubr.msk.f32.gmra.mrb[30].mxu0 %vm499_vm1, %v490_v32 }
  0xe6   : > { %v1902_v35 = vpop.f32.mrb[0].mxu0 }
  0xe7   : > { %v672_v36 = vadd.f32 %v1902_v35, %v2335_v34  ;;  %v666_v37 = vpop.f32.mrb[1].mxu0 }
  0xe8   : > { %v667_v38 = vadd.f32 %v2335_v34, %v666_v37 }
  0xe9   : > { %v826_v39 = vmax.f32 %v672_v36, 0.0 }
  0xea   : > { %v825_v40 = vmax.f32 %v667_v38, 0.0  ;;  %v1905_v41 = vpop.f32.mrb[2].mxu0 }
  0xeb   : > { %v859_v42 = vsel %vm857_vm2, %v826_v39, 0.0  ;;  %v682_v43 = vadd.f32 %v1905_v41, %v2335_v34  ;;  %v676_v44 = vpop.f32.mrb[3].mxu0 }
  0xec   : > { %v858_v45 = vsel %vm857_vm2, %v825_v40, 0.0  ;;  %v677_v46 = vadd.f32 %v2335_v34, %v676_v44  ;;  %v2343_v47 = vpack.c.bf16 %v826_v39, %v825_v40 }
  0xed   : > { %v860_v48 = vadd.f32 %v859_v42, %v858_v45  ;;  %v828_v49 = vmax.f32 %v682_v43, 0.0 }
  0xee   : > { %v827_v50 = vmax.f32 %v677_v46, 0.0  ;;  %v1908_v51 = vpop.f32.mrb[4].mxu0 }
  0xef   : > { %v692_v52 = vadd.f32 %v1908_v51, %v2335_v34  ;;  %v686_v53 = vpop.f32.mrb[5].mxu0  ;;  %v863_v59 = vsel %vm857_vm2, %v828_v49, 0.0 }
  0xf0   : > { %v861_v54 = vsel %vm857_vm2, %v827_v50, 0.0  ;;  %v2347_v55 = vpack.c.bf16 %v828_v49, %v827_v50  ;;  %v687_v56 = vadd.f32 %v2335_v34, %v686_v53 }
  0xf1   : > { %v862_v57 = vadd.f32 %v861_v54, %v860_v48  ;;  %v830_v58 = vmax.f32 %v692_v52, 0.0 }
  0xf2   : > { %v829_v60 = vmax.f32 %v687_v56, 0.0  ;;  %v1911_v61 = vpop.f32.mrb[6].mxu0 }
  0xf3   : > { %v864_v62 = vadd.f32 %v863_v59, %v862_v57  ;;  %v702_v63 = vadd.f32 %v1911_v61, %v2335_v34  ;;  %v696_v0 = vpop.f32.mrb[7].mxu0  ;;  %v867_v6 = vsel %vm857_vm2, %v830_v58, 0.0 }
  0xf4   : > { %v865_v1 = vsel %vm857_vm2, %v829_v60, 0.0  ;;  %v2353_v2 = vpack.c.bf16 %v830_v58, %v829_v60  ;;  %v697_v3 = vadd.f32 %v2335_v34, %v696_v0 }
  0xf5   : > { %v866_v4 = vadd.f32 %v865_v1, %v864_v62  ;;  %v832_v5 = vmax.f32 %v702_v63, 0.0 }
  0xf6   : > { %v831_v7 = vmax.f32 %v697_v3, 0.0  ;;  %v1914_v8 = vpop.f32.mrb[8].mxu0 }
  0xf7   : > { %v868_v9 = vadd.f32 %v867_v6, %v866_v4  ;;  %v712_v10 = vadd.f32 %v1914_v8, %v2335_v34  ;;  %v706_v11 = vpop.f32.mrb[9].mxu0  ;;  %v871_v17 = vsel %vm857_vm2, %v832_v5, 0.0 }
  0xf8   : > { %v869_v12 = vsel %vm857_vm2, %v831_v7, 0.0  ;;  %v2359_v13 = vpack.c.bf16 %v832_v5, %v831_v7  ;;  %v707_v14 = vadd.f32 %v2335_v34, %v706_v11 }
  0xf9   : > { %v870_v15 = vadd.f32 %v869_v12, %v868_v9  ;;  %v834_v16 = vmax.f32 %v712_v10, 0.0 }
  0xfa   : > { %v833_v18 = vmax.f32 %v707_v14, 0.0  ;;  %v1917_v19 = vpop.f32.mrb[10].mxu0 }
  0xfb   : > { %v872_v20 = vadd.f32 %v871_v17, %v870_v15  ;;  %v722_v21 = vadd.f32 %v1917_v19, %v2335_v34  ;;  %v716_v22 = vpop.f32.mrb[11].mxu0  ;;  %v875_v28 = vsel %vm857_vm2, %v834_v16, 0.0 }
  0xfc   : > { %v873_v23 = vsel %vm857_vm2, %v833_v18, 0.0  ;;  %v2365_v24 = vpack.c.bf16 %v834_v16, %v833_v18  ;;  %v717_v25 = vadd.f32 %v2335_v34, %v716_v22 }
  0xfd   : > { %v874_v26 = vadd.f32 %v873_v23, %v872_v20  ;;  %v836_v27 = vmax.f32 %v722_v21, 0.0 }
  0xfe   : > { %v835_v29 = vmax.f32 %v717_v25, 0.0  ;;  %v1920_v30 = vpop.f32.mrb[12].mxu0 }
  0xff   : > { %v876_v31 = vadd.f32 %v875_v28, %v874_v26  ;;  %v732_v32 = vadd.f32 %v1920_v30, %v2335_v34  ;;  %v726_v33 = vpop.f32.mrb[13].mxu0  ;;  %v879_v40 = vsel %vm857_vm2, %v836_v27, 0.0 }
 0x100   : > { %v877_v35 = vsel %vm857_vm2, %v835_v29, 0.0  ;;  %v2371_v36 = vpack.c.bf16 %v836_v27, %v835_v29  ;;  %v727_v37 = vadd.f32 %v2335_v34, %v726_v33 }
 0x101   : > { %v878_v38 = vadd.f32 %v877_v35, %v876_v31  ;;  %v838_v39 = vmax.f32 %v732_v32, 0.0 }
 0x102   : > { %v837_v41 = vmax.f32 %v727_v37, 0.0  ;;  %v1923_v42 = vpop.f32.mrb[14].mxu0 }
 0x103   : > { %v880_v43 = vadd.f32 %v879_v40, %v878_v38  ;;  %v742_v44 = vadd.f32 %v1923_v42, %v2335_v34  ;;  %v736_v45 = vpop.f32.mrb[15].mxu0  ;;  %v883_v52 = vsel %vm857_vm2, %v838_v39, 0.0 }
 0x104   : > { %v881_v46 = vsel %vm857_vm2, %v837_v41, 0.0  ;;  %v2377_v48 = vpack.c.bf16 %v838_v39, %v837_v41  ;;  %v737_v49 = vadd.f32 %v2335_v34, %v736_v45 }
 0x105   : > { %v882_v50 = vadd.f32 %v881_v46, %v880_v43  ;;  %v840_v51 = vmax.f32 %v742_v44, 0.0 }
 0x106   : > { %v839_v53 = vmax.f32 %v737_v49, 0.0  ;;  %v1926_v54 = vpop.f32.mrb[16].mxu0 }
 0x107   : > { %v884_v56 = vadd.f32 %v883_v52, %v882_v50  ;;  %v752_v57 = vadd.f32 %v1926_v54, %v2335_v34  ;;  %v746_v58 = vpop.f32.mrb[17].mxu0  ;;  %v887_v0 = vsel %vm857_vm2, %v840_v51, 0.0 }
 0x108   : > { %v885_v59 = vsel %vm857_vm2, %v839_v53, 0.0  ;;  %v2383_v60 = vpack.c.bf16 %v840_v51, %v839_v53  ;;  %v747_v61 = vadd.f32 %v2335_v34, %v746_v58 }
 0x109   : > { %v886_v62 = vadd.f32 %v885_v59, %v884_v56  ;;  %v842_v63 = vmax.f32 %v752_v57, 0.0 }
 0x10a   : > { %v841_v1 = vmax.f32 %v747_v61, 0.0  ;;  %v1929_v3 = vpop.f32.mrb[18].mxu0 }
 0x10b   : > { %v888_v4 = vadd.f32 %v887_v0, %v886_v62  ;;  %v762_v5 = vadd.f32 %v1929_v3, %v2335_v34  ;;  %v756_v6 = vpop.f32.mrb[19].mxu0  ;;  %v891_v12 = vsel %vm857_vm2, %v842_v63, 0.0 }
 0x10c   : > { %v889_v7 = vsel %vm857_vm2, %v841_v1, 0.0  ;;  %v757_v8 = vadd.f32 %v2335_v34, %v756_v6  ;;  %v2031_v9 = vpack.c.bf16 %v842_v63, %v841_v1 }
 0x10d   : > { %v890_v10 = vadd.f32 %v889_v7, %v888_v4  ;;  %v844_v11 = vmax.f32 %v762_v5, 0.0 }
 0x10e   : > { %v843_v14 = vmax.f32 %v757_v8, 0.0  ;;  %v1932_v15 = vpop.f32.mrb[20].mxu0  ;;  %2032 = vmatprep.subr.bf16.mxu1 %v2031_v9 }
 0x10f   : > { %v892_v16 = vadd.f32 %v891_v12, %v890_v10  ;;  %v772_v17 = vadd.f32 %v1932_v15, %v2335_v34  ;;  %v766_v18 = vpop.f32.mrb[21].mxu0  ;;  %2034 = vmatpush3.bf16.msra.mxu1 %v2343_v47  ;;  %v895_v25 = vsel %vm857_vm2, %v844_v11, 0.0 }
 0x110   : > { %v893_v19 = vsel %vm857_vm2, %v843_v14, 0.0  ;;  %v2035_v20 = vpack.c.bf16 %v844_v11, %v843_v14  ;;  %v767_v21 = vadd.f32 %v2335_v34, %v766_v18 }
 0x111   : > { %v894_v22 = vadd.f32 %v893_v19, %v892_v16  ;;  %v846_v23 = vmax.f32 %v772_v17, 0.0  ;;  %v1049_v19 = vld [vmem:[%s2600_s3] sm:$0xff] }
 0x112   : > { %v845_v26 = vmax.f32 %v767_v21, 0.0  ;;  %v1935_v27 = vpop.f32.mrb[22].mxu0  ;;  %2036 = vmatprep.subr.bf16.mxu1 %v2035_v20  ;;  %v1050_v20 = vld [vmem:[%s2600_s3 + $0x8] sm:$0xff] }
 0x113   : > { %v896_v28 = vadd.f32 %v895_v25, %v894_v22  ;;  %v782_v29 = vadd.f32 %v1935_v27, %v2335_v34  ;;  %v776_v30 = vpop.f32.mrb[23].mxu0  ;;  %2038 = vmatpush3.bf16.msra.mxu1 %v2347_v55  ;;  %v899_v37 = vsel %vm857_vm2, %v846_v23, 0.0  ;;  %v2063_v25 = vpack.c.bf16 %v1050_v20, %v1049_v19 }
 0x114   : > { %v897_v47 = vsel %vm857_vm2, %v845_v26, 0.0  ;;  %v2039_v31 = vpack.c.bf16 %v846_v23, %v845_v26  ;;  %v777_v32 = vadd.f32 %v2335_v34, %v776_v30  ;;  %v930_v30 = vld [vmem:[%s2604_s7 + $0x10] sm:$0xff] }
 0x115   : > { %v898_v33 = vadd.f32 %v897_v47, %v896_v28  ;;  %v848_v35 = vmax.f32 %v782_v29, 0.0  ;;  %v928_v29 = vld [vmem:[%s2604_s7] sm:$0xff] }
 0x116   : > { %v847_v38 = vmax.f32 %v777_v32, 0.0  ;;  %v1938_v39 = vpop.f32.mrb[24].mxu0  ;;  %2040 = vmatprep.subr.bf16.mxu1 %v2039_v31  ;;  %v932_v47 = vld [vmem:[%s2604_s7 + $0x20] sm:$0xff]  ;;  %v935_v31 = vld [vmem:[%s2604_s7 + $0x38] sm:$0xff]  ;;  %v934_v32 = vld [vmem:[%s2604_s7 + $0x30] sm:$0xff] }
 0x117   : > { %v900_v40 = vadd.f32 %v899_v37, %v898_v33  ;;  %v792_v41 = vadd.f32 %v1938_v39, %v2335_v34  ;;  %v786_v42 = vpop.f32.mrb[25].mxu0  ;;  %2042 = vmatpush3.bf16.msra.mxu1 %v2353_v2  ;;  %v903_v49 = vsel %vm857_vm2, %v848_v35, 0.0  ;;  %v937_v33 = vld [vmem:[%s2604_s7 + $0x48] sm:$0xff]  ;;  %v939_v37 = vld [vmem:[%s2604_s7 + $0x58] sm:$0xff] }
 0x118   : > { %v901_v55 = vsel %vm857_vm2, %v847_v38, 0.0  ;;  %v2043_v43 = vpack.c.bf16 %v848_v35, %v847_v38  ;;  %v787_v44 = vadd.f32 %v2335_v34, %v786_v42  ;;  %v936_v35 = vld [vmem:[%s2604_s7 + $0x40] sm:$0xff]  ;;  %v938_v38 = vld [vmem:[%s2604_s7 + $0x50] sm:$0xff]  ;;  %v941_v39 = vld [vmem:[%s2604_s7 + $0x68] sm:$0xff] }
 0x119   : > { %v902_v45 = vadd.f32 %v901_v55, %v900_v40  ;;  %v850_v46 = vmax.f32 %v792_v41, 0.0  ;;  %v940_v40 = vld [vmem:[%s2604_s7 + $0x60] sm:$0xff]  ;;  %v943_v41 = vld [vmem:[%s2604_s7 + $0x78] sm:$0xff]  ;;  %v942_v42 = vld [vmem:[%s2604_s7 + $0x70] sm:$0xff] }
 0x11a   : > { %v849_v50 = vmax.f32 %v787_v44, 0.0  ;;  %v1941_v51 = vpop.f32.mrb[26].mxu0  ;;  %2044 = vmatprep.subr.bf16.mxu1 %v2043_v43 }
 0x11b   : > { %v904_v52 = vadd.f32 %v903_v49, %v902_v45  ;;  %v802_v53 = vadd.f32 %v1941_v51, %v2335_v34  ;;  %v796_v54 = vpop.f32.mrb[27].mxu0  ;;  %2046 = vmatpush3.bf16.msra.mxu1 %v2359_v13  ;;  %v907_v61 = vsel %vm857_vm2, %v850_v46, 0.0 }
 0x11c   : > { %v905_v2 = vsel %vm857_vm2, %v849_v50, 0.0  ;;  %v2047_v56 = vpack.c.bf16 %v850_v46, %v849_v50  ;;  %v797_v57 = vadd.f32 %v2335_v34, %v796_v54 }
 0x11d   : > { %v906_v58 = vadd.f32 %v905_v2, %v904_v52  ;;  %v852_v59 = vmax.f32 %v802_v53, 0.0 }
 0x11e   : > { %v851_v62 = vmax.f32 %v797_v57, 0.0  ;;  %v1944_v63 = vpop.f32.mrb[28].mxu0  ;;  %2048 = vmatprep.subr.bf16.mxu1 %v2047_v56 }
 0x11f   : > { %v908_v0 = vadd.f32 %v907_v61, %v906_v58  ;;  %v812_v1 = vadd.f32 %v1944_v63, %v2335_v34  ;;  %v806_v3 = vpop.f32.mrb[29].mxu0  ;;  %2050 = vmatpush3.bf16.msra.mxu1 %v2365_v24  ;;  %v911_v8 = vsel %vm857_vm2, %v852_v59, 0.0 }
 0x120   : > { %v909_v13 = vsel %vm857_vm2, %v851_v62, 0.0  ;;  %v2051_v4 = vpack.c.bf16 %v852_v59, %v851_v62  ;;  %v807_v5 = vadd.f32 %v2335_v34, %v806_v3 }
 0x121   : > { %v910_v6 = vadd.f32 %v909_v13, %v908_v0  ;;  %v854_v7 = vmax.f32 %v812_v1, 0.0 }
 0x122   : > { %v853_v9 = vmax.f32 %v807_v5, 0.0  ;;  %v1947_v10 = vpop.f32.mrb[30].mxu0  ;;  %2052 = vmatprep.subr.bf16.mxu1 %v2051_v4  ;;  %v1218_v5 = vld [vmem:[%s2605_s8] sm:$0xff] }
 0x123   : > { %v912_v11 = vadd.f32 %v911_v8, %v910_v6  ;;  %v822_v12 = vadd.f32 %v1947_v10, %v2335_v34  ;;  %v816_v14 = vpop.f32.mrb[31].mxu0  ;;  %2054 = vmatpush3.bf16.msra.mxu1 %v2371_v36  ;;  %v915_v21 = vsel %vm857_vm2, %v854_v7, 0.0  ;;  %v1302_v6 = vld [vmem:[%s2602_s5] sm:$0xff]  ;;  %v1304_v8 = vld [vmem:[%s2602_s5 + $0x10] sm:$0xff]  ;;  %v1305_v10 = vld [vmem:[%s2602_s5 + $0x18] sm:$0xff] }
 0x124   : > { %v913_v24 = vsel %vm857_vm2, %v853_v9, 0.0  ;;  %v2055_v15 = vpack.c.bf16 %v854_v7, %v853_v9  ;;  %v817_v16 = vadd.f32 %v2335_v34, %v816_v14  ;;  %v1303_v7 = vld [vmem:[%s2602_s5 + $0x8] sm:$0xff]  ;;  %v1746_v14 = vld [vmem:[%s2601_s4] ss:$0 sm:$0xff] }
 0x125   : > { %v914_v17 = vadd.f32 %v913_v24, %v912_v11  ;;  %v856_v18 = vmax.f32 %v822_v12, 0.0  ;;  %v2083_v9 = vpack.c.bf16 %v1303_v7, %v1302_v6  ;;  %v2087_v11 = vpack.c.bf16 %v1305_v10, %v1304_v8 }
 0x126   : > { %v855_v22 = vmax.f32 %v817_v16, 0.0  ;;  %2056 = vmatprep.subr.bf16.mxu1 %v2055_v15  ;;  %v2163_v12 = vmov 0.0|0.0  }
 0x127   : > { %v916_v36 = vadd.f32 %v915_v21, %v914_v17  ;;  %2058 = vmatpush3.bf16.msra.mxu1 %v2377_v48  ;;  %v919_v27 = vsel %vm857_vm2, %v856_v18, 0.0  ;;  %v931_v48 = vld [vmem:[%s2604_s7 + $0x18] sm:$0xff]  ;;  %2084 = vmatprep.subr.bf16.mxu0 %v2083_v9 }
 0x128   : > { %v917_v23 = vsel %vm857_vm2, %v855_v22, 0.0  ;;  %v2059_v34 = vpack.c.bf16 %v856_v18, %v855_v22  ;;  %2086 = vmatpush3.bf16.msra.mxu0 %v2083_v9 }
 0x129   : > { %v918_v26 = vadd.f32 %v917_v23, %v916_v36  ;;  %2088 = vmatprep.subr.bf16.mxu0 %v2087_v11 }
 0x12a   : > { %2060 = vmatprep.subr.bf16.mxu1 %v2059_v34 }
 0x12b   : > { %v2430_v28 = vadd.f32 %v919_v27, %v918_v26  ;;  %2062 = vmatpush3.bf16.msra.mxu1 %v2383_v60  ;;  %v933_v60 = vld [vmem:[%s2604_s7 + $0x28] sm:$0xff] }
 0x12c   : > { %2064 = vmatprep.subr.bf16.mxu1 %v2063_v25  ;;  %2090 = vmatpush3.bf16.msra.mxu0 %v2087_v11 }
 0x12d   : > { %2097 = vmatprep.subr.bf16.mxu0 %v2163_v12  ;;  %v921_v9 = vrot.slane %v2430_v28, 4 }
 0x12e   : > { %1009 = vmatmul.mubr.f32.vlgmr.msra.gmra.mrb[0].mxu1 %v928_v29 }
 0x12f   : > { %1013 = vmatprep.mubr.f32.mxu1 %v931_v48  ;;  %2066 = vmatpush3.bf16.msra.mxu1 %v2063_v25  ;;  %v922_v10 = vadd.f32 %v921_v9, %v2430_v28 }
 0x131   : > { %v923_v11 = vrot.slane %v922_v10, 2 }
 0x132   : > { %1014 = vmatmul.mubr.f32.gmra.mrb[2].mxu1 %v930_v30 }
 0x133   : > { %1018 = vmatprep.mubr.f32.mxu1 %v933_v60 }
 0x136   : > { %1019 = vmatmul.mubr.f32.gmra.mrb[4].mxu1 %v932_v47 }
 0x137   : > { %1023 = vmatprep.mubr.f32.mxu1 %v935_v31 }
 0x13a   : > { %1024 = vmatmul.mubr.f32.gmra.mrb[6].mxu1 %v934_v32 }
 0x13b   : > { %1028 = vmatprep.mubr.f32.mxu1 %v937_v33 }
 0x13e   : > { %1029 = vmatmul.mubr.f32.gmra.mrb[8].mxu1 %v936_v35 }
 0x13f   : > { %1033 = vmatprep.mubr.f32.mxu1 %v939_v37 }
 0x142   : > { %1034 = vmatmul.mubr.f32.gmra.mrb[10].mxu1 %v938_v38 }
 0x143   : > { %1038 = vmatprep.mubr.f32.mxu1 %v941_v39 }
 0x146   : > { %1039 = vmatmul.mubr.f32.gmra.mrb[12].mxu1 %v940_v40 }
 0x147   : > { %1043 = vmatprep.mubr.f32.mxu1 %v943_v41 }
 0x14a   : > { %1044 = vmatmul.mubr.f32.gmra.mrb[14].mxu1 %v942_v42 }
 0x201   : > { %v1831_v55 = vpop.f32.mrb[0].mxu1 }
 0x202   : > { %v1832_v43 = vpop.f32.mrb[1].mxu1 }
 0x203   : > { %v1833_v44 = vadd.f32 %v1832_v43, %v1831_v55 }
 0x205   : > { %v1834_v45 = vpop.f32.mrb[2].mxu1  ;;  %1952 = vmatprep.mubr.msk.f32.mxu1 %vm857_vm2, %v1833_v44 }
 0x206   : > { %v1835_v46 = vpop.f32.mrb[3].mxu1 }
 0x207   : > { %v1836_v49 = vadd.f32 %v1835_v46, %v1834_v45 }
 0x209   : > { %v1837_v50 = vpop.f32.mrb[4].mxu1  ;;  %1953 = vmatmul.mubr.msk.f32.vlgmr.msra.gmra.mrb[16].mxu1 %vm857_vm2, %v1836_v49 }
 0x20a   : > { %v1838_v51 = vpop.f32.mrb[5].mxu1 }
 0x20b   : > { %v1839_v52 = vadd.f32 %v1838_v51, %v1837_v50 }
 0x20d   : > { %v1840_v53 = vpop.f32.mrb[6].mxu1  ;;  %1955 = vmatprep.mubr.msk.f32.mxu1 %vm857_vm2, %v1839_v52 }
 0x20e   : > { %v1841_v54 = vpop.f32.mrb[7].mxu1 }
 0x20f   : > { %v1842_v2 = vadd.f32 %v1841_v54, %v1840_v53  ;;  %v1408_v54 = vld [vmem:[%s2607_s10] sm:$0xff] }
 0x211   : > { %v1843_v56 = vpop.f32.mrb[8].mxu1  ;;  %1956 = vmatmul.mubr.msk.f32.gmra.mrb[18].mxu1 %vm857_vm2, %v1842_v2  ;;  %v1409_v2 = vld [vmem:[%s2607_s10 + $0x8] sm:$0xff] }
 0x212   : > { %v1844_v57 = vpop.f32.mrb[9].mxu1 }
 0x213   : > { %v1845_v58 = vadd.f32 %v1844_v57, %v1843_v56 }
 0x215   : > { %v1846_v59 = vpop.f32.mrb[10].mxu1  ;;  %1958 = vmatprep.mubr.msk.f32.mxu1 %vm857_vm2, %v1845_v58 }
 0x216   : > { %v1847_v61 = vpop.f32.mrb[11].mxu1 }
 0x217   : > { %v1848_v62 = vadd.f32 %v1847_v61, %v1846_v59  ;;  %v1219_v59 = vld [vmem:[%s2605_s8 + $0x8] sm:$0xff]  ;;  %v2092_v61 = vpack.c.bf16 %v1409_v2, %v1408_v54  ;;  %v1640_v2 = vld [vmem:[%s2609_s12] sm:$0x1] }
 0x219   : > { %v1849_v63 = vpop.f32.mrb[12].mxu1  ;;  %1959 = vmatmul.mubr.msk.f32.gmra.mrb[20].mxu1 %vm857_vm2, %v1848_v62  ;;  %v1410_v62 = vld [vmem:[%s2607_s10 + $0x10] sm:$0xff] }
 0x21a   : > { %v1850_v0 = vpop.f32.mrb[13].mxu1 }
 0x21b   : > { %v1851_v1 = vadd.f32 %v1850_v0, %v1849_v63  ;;  %v1411_v63 = vld [vmem:[%s2607_s10 + $0x18] sm:$0xff] }
 0x21d   : > { %v1852_v3 = vpop.f32.mrb[14].mxu1  ;;  %1961 = vmatprep.mubr.msk.f32.mxu1 %vm857_vm2, %v1851_v1 }
 0x21e   : > { %v1853_v13 = vpop.f32.mrb[15].mxu1 }
 0x21f   : > { %v1854_v4 = vadd.f32 %v1853_v13, %v1852_v3  ;;  %v2095_v3 = vpack.c.bf16 %v1411_v63, %v1410_v62  ;;  %v2165_v13 = vmov 0.0  }
 0x221   : > { %1962 = vmatmul.mubr.msk.f32.gmra.mrb[22].mxu1 %vm857_vm2, %v1854_v4 }
 0x222   : > { %1980 = vmatprep.mubr.msk.f32.mxu1 %vm1220_vm3, %v1218_v5 }
 0x2dc   : > { %v1954_v24 = vpop.f32.mrb[16].mxu1 }
 0x2dd   : > { %v1154_v15 = vadd.f32 %v1954_v24, %v1746_v14  ;;  %v1148_v16 = vpop.f32.mrb[17].mxu1 }
 0x2de   : > { %v1149_v17 = vadd.f32 %v1746_v14, %v1148_v16  ;;  %v1407_v16 = vld [vmem:[%s2606_s9 + $0x8] sm:$0xff] }
 0x2df   : > { %v1188_v18 = vmax.f32 %v1154_v15, 0.0  ;;  %v1406_v15 = vld [vmem:[%s2606_s9] sm:$0xff] }
 0x2e0   : > { %v1187_v19 = vmax.f32 %v1149_v17, 0.0 }
 0x2e1   : > { %v1197_v20 = vsel %vm1195_vm4, %v1188_v18, 0.0 }
 0x2e2   : > { %v1196_v21 = vsel %vm1195_vm4, %v1187_v19, 0.0  ;;  %v2067_v22 = vpack.c.bf16 %v1188_v18, %v1187_v19  ;;  %v2098_v18 = vpack.c.bf16 %v1407_v16, %v1406_v15 }
 0x2e3   : > { %v1198_v36 = vadd.f32 %v1197_v20, %v1196_v21 }
 0x2e4   : > { %v1957_v23 = vpop.f32.mrb[18].mxu1  ;;  %2068 = vmatprep.subr.bf16.mxu1 %v2067_v22 }
 0x2e5   : > { %v1164_v34 = vadd.f32 %v1957_v23, %v1746_v14  ;;  %v1158_v25 = vpop.f32.mrb[19].mxu1  ;;  %2070 = vmatpush3.bf16.msra.mxu1 %v2067_v22  ;;  %v1559_v23 = vld [vmem:[%s2608_s11 + $0x8] sm:$0xff] }
 0x2e6   : > { %v1159_v26 = vadd.f32 %v1746_v14, %v1158_v25  ;;  %v1560_v25 = vld [vmem:[%s2608_s11 + $0x10] sm:$0xff] }
 0x2e7   : > { %v1190_v27 = vmax.f32 %v1164_v34, 0.0 }
 0x2e8   : > { %v1189_v29 = vmax.f32 %v1159_v26, 0.0  ;;  %v1561_v26 = vld [vmem:[%s2608_s11 + $0x18] sm:$0xff] }
 0x2e9   : > { %v1201_v47 = vsel %vm1195_vm4, %v1190_v27, 0.0 }
 0x2ea   : > { %v1199_v48 = vsel %vm1195_vm4, %v1189_v29, 0.0  ;;  %v2071_v30 = vpack.c.bf16 %v1190_v27, %v1189_v29  ;;  %v2104_v27 = vpack.c.bf16 %v1561_v26, %v1560_v25  ;;  %v1562_v29 = vld [vmem:[%s2608_s11 + $0x20] sm:$0xff] }
 0x2eb   : > { %v1200_v60 = vadd.f32 %v1199_v48, %v1198_v36  ;;  %v1558_v36 = vld [vmem:[%s2608_s11] sm:$0xff]  ;;  %v1563_v48 = vld [vmem:[%s2608_s11 + $0x28] sm:$0xff] }
 0x2ec   : > { %v1960_v31 = vpop.f32.mrb[20].mxu1  ;;  %2072 = vmatprep.subr.bf16.mxu1 %v2071_v30  ;;  %v2101_v34 = vpack.c.bf16 %v1559_v23, %v1558_v36 }
 0x2ed   : > { %v1174_v32 = vadd.f32 %v1960_v31, %v1746_v14  ;;  %v1168_v33 = vpop.f32.mrb[21].mxu1  ;;  %v1202_v35 = vadd.f32 %v1201_v47, %v1200_v60  ;;  %2074 = vmatpush3.bf16.msra.mxu1 %v2071_v30  ;;  %v2107_v30 = vpack.c.bf16 %v1563_v48, %v1562_v29  ;;  %v1564_v60 = vld [vmem:[%s2608_s11 + $0x30] sm:$0xff]  ;;  %v1565_v47 = vld [vmem:[%s2608_s11 + $0x38] sm:$0xff] }
 0x2ee   : > { %v1169_v37 = vadd.f32 %v1746_v14, %v1168_v33  ;;  %v2110_v31 = vpack.c.bf16 %v1565_v47, %v1564_v60 }
 0x2ef   : > { %v1192_v38 = vmax.f32 %v1174_v32, 0.0  ;;  %v1757_v32 = vld [vmem:[%s2603_s6] ss:$0 sm:$0xff] }
 0x2f0   : > { %v1191_v39 = vmax.f32 %v1169_v37, 0.0 }
 0x2f1   : > { %v1205_v55 = vsel %vm1195_vm4, %v1192_v38, 0.0 }
 0x2f2   : > { %v1203_v40 = vsel %vm1195_vm4, %v1191_v39, 0.0  ;;  %v2075_v41 = vpack.c.bf16 %v1192_v38, %v1191_v39 }
 0x2f3   : > { %v1204_v42 = vadd.f32 %v1203_v40, %v1202_v35 }
 0x2f4   : > { %v1963_v43 = vpop.f32.mrb[22].mxu1  ;;  %2076 = vmatprep.subr.bf16.mxu1 %v2075_v41 }
 0x2f5   : > { %v1184_v44 = vadd.f32 %v1963_v43, %v1746_v14  ;;  %v1178_v45 = vpop.f32.mrb[23].mxu1  ;;  %v1206_v46 = vadd.f32 %v1205_v55, %v1204_v42  ;;  %2078 = vmatpush3.bf16.msra.mxu1 %v2075_v41 }
 0x2f6   : > { %v1179_v49 = vadd.f32 %v1746_v14, %v1178_v45  ;;  %v924_v14 = vadd.f32 %v923_v11, %v922_v10 }
 0x2f7   : > { %v1194_v50 = vmax.f32 %v1184_v44, 0.0 }
 0x2f8   : > { %v1193_v51 = vmax.f32 %v1179_v49, 0.0  ;;  %v925_v24 = vrot.slane %v924_v14, 1 }
 0x2f9   : > { %v1209_v57 = vsel %vm1195_vm4, %v1194_v50, 0.0 }
 0x2fa   : > { %v1207_v52 = vsel %vm1195_vm4, %v1193_v51, 0.0  ;;  %v2079_v53 = vpack.c.bf16 %v1194_v50, %v1193_v51  ;;  %v926_v19 = vadd.f32 %v925_v24, %v924_v14 }
 0x2fb   : > { %v1208_v56 = vadd.f32 %v1207_v52, %v1206_v46 }
 0x2fc   : > { %2080 = vmatprep.subr.bf16.mxu1 %v2079_v53  ;;  %v927_v28 = vmul.f32 0.00390625, %v926_v19 }
 0x2fd   : > { %v1210_v58 = vadd.f32 %v1209_v57, %v1208_v56  ;;  %2082 = vmatpush3.bf16.msra.mxu1 %v2079_v53 }
 0x2fe   : > { %2091 = vmatprep.subr.bf16.mxu1 %v2163_v12 }
 0x2ff   : > { %v1211_v0 = vrot.slane %v1210_v58, 4 }
 0x300   : > { %1981 = vmatmul.mubr.msk.f32.vlgmr.msra.gmra.mrb[24].mxu1 %vm1220_vm3, %v1219_v59 }
 0x301   : > { %v1212_v1 = vadd.f32 %v1211_v0, %v1210_v58  ;;  %2093 = vmatpush3.bf16.msra.mxu1 %v2092_v61  ;;  %2002 = vmatprep.mubr.msk.f32.mxu1 %vm2164_vm5, %v2165_v13 }
 0x302   : > { %2094 = vmatprep.subr.bf16.mxu1 %v2163_v12 }
 0x303   : > { %v1213_v4 = vrot.slane %v1212_v1, 2 }
 0x305   : > { %v1214_v5 = vadd.f32 %v1213_v4, %v1212_v1  ;;  %2096 = vmatpush3.bf16.msra.mxu1 %v2095_v3 }
 0x307   : > { %v1215_v6 = vrot.slane %v1214_v5, 1 }
 0x309   : > { %v1216_v7 = vadd.f32 %v1215_v6, %v1214_v5 }
 0x30b   : > { %v1217_v8 = vmul.f32 0.015625, %v1216_v7 }
 0x30d   : > { %2003 = vmatmul.mubr.msk.f32.vlgmr.msra.gmra.mrb[26].mxu1 %vm1195_vm4, %v1217_v8 }
 0x3d3   : > { %v1982_v17 = vpop.f32.mrb[24].mxu1 }
 0x3d4   : > { %v1293_v20 = vpop.f32.mrb[25].mxu1 }
 0x3d5   : > { %1991 = vmatprep.mubr.msk.f32.mxu0 %vm1195_vm4, %v1293_v20 }
 0x3d6   : > { %1992 = vmatmul.mubr.msk.f32.vlgmr.msra.gmra.mrb[32].mxu0 %vm1195_vm4, %v1982_v17 }
 0x3d7   : > { %2099 = vmatpush3.bf16.msra.mxu0 %v2098_v18  ;;  %2009 = vmatprep.mubr.msk.f32.mxu0 %vm2164_vm5, %v2165_v13 }
 0x3d8   : > { %2100 = vmatprep.subr.bf16.mxu0 %v2163_v12 }
 0x3da   : > { %2010 = vmatmul.mubr.msk.f32.vlgmr.msra.gmra.mrb[34].mxu0 %vm857_vm2, %v927_v28 }
 0x3db   : > { %2028 = vmatprep.mubr.msk.f32.mxu0 %vm2164_vm5, %v2165_v13  ;;  %2102 = vmatpush3.bf16.msra.mxu0 %v2101_v34 }
 0x3dc   : > { %2103 = vmatprep.subr.bf16.mxu0 %v2163_v12 }
 0x3df   : > { %2105 = vmatpush3.bf16.msra.mxu0 %v2104_v27 }
 0x3e0   : > { %v1481_v21 = vpop.f32.mrb[26].mxu1  ;;  %2106 = vmatprep.subr.bf16.mxu0 %v2163_v12 }
 0x3e1   : > { %v2004_v22 = vpop.f32.mrb[27].mxu1 }
 0x3e3   : > { %2108 = vmatpush3.bf16.msra.mxu0 %v2107_v30 }
 0x3e4   : > { %2109 = vmatprep.subr.bf16.mxu0 %v2163_v12 }
 0x3e7   : > { %2111 = vmatpush3.bf16.msra.mxu0 %v2110_v31 }
 0x4a9   : > { %v1993_v33 = vpop.f32.mrb[32].mxu0 }
 0x4aa   : > { %v1391_v35 = vadd.f32 %v1993_v33, %v1757_v32  ;;  %v1385_v37 = vpop.f32.mrb[33].mxu0 }
 0x4ab   : > { %v1386_v38 = vadd.f32 %v1757_v32, %v1385_v37 }
 0x4ac   : > { %v1395_v39 = vmax.f32 %v1391_v35, 0.0 }
 0x4ad   : > { %v1394_v12 = vmax.f32 %v1386_v38, 0.0  ;;  %v1554_v40 = vpop.f32.mrb[34].mxu0 }
 0x4ae   : > { %v1397_v41 = vsel %vm1220_vm3, %v1395_v39, 0.0  ;;  %v1555_v42 = vadd.f32 %v1554_v40, %v1481_v21  ;;  %v2011_v55 = vpop.f32.mrb[35].mxu0 }
 0x4af   : > { %v1396_v43 = vsel %vm1220_vm3, %v1394_v12, 0.0 }
 0x4b0   : > { %v1398_v44 = vadd.f32 %v1397_v41, %v1396_v43 }
 0x4b2   : > { %v1399_v45 = vrot.slane %v1398_v44, 4 }
 0x4b4   : > { %v1400_v46 = vadd.f32 %v1399_v45, %v1398_v44 }
 0x4b6   : > { %v1401_v49 = vrot.slane %v1400_v46, 2 }
 0x4b8   : > { %v1402_v50 = vadd.f32 %v1401_v49, %v1400_v46 }
 0x4ba   : > { %v1403_v51 = vrot.slane %v1402_v50, 1 }
 0x4bc   : > { %v1404_v52 = vadd.f32 %v1403_v51, %v1402_v50 }
 0x4be   : > { %v1405_v53 = vmul.f32 0.0625, %v1404_v52 }
 0x4c0   : > { %2029 = vmatmul.mubr.msk.f32.vlgmr.msra.gmra.mrb[36].mxu0 %vm1220_vm3, %v1405_v53 }
 0x593   : > { %v1635_v54 = vpop.f32.mrb[36].mxu0 }
 0x594   : > { %v1639_v56 = vadd.f32 %v1635_v54, %v1555_v42  ;;  %v2030_v57 = vpop.f32.mrb[37].mxu0 }
 0x596   : > { %v1641_v58 = vadd.f32 %v1640_v2, %v1639_v56 }
 0x598   : > { %1642 = vst [vmem:[%s456_s30] sm:$0x1] %v1641_v58 }
 0x599 PF: > { %s23_s27 = sadd.s32 1, %s2161_s27   ;;  %s2611_s25 = smov %s2157_s26 }
 0x59a   : > { %p20_p5 = scmp.ge.s32.totalorder %s23_s27, 4   ;;  %s2612_s26 = smov %s2614_s28 }
 0x59c   :  { %22 = sbr.rel (!%p20_p5) target bundleno = 2 (0x2), region = 102 }

</bundles_post_ra>
